<compile_context>
chip_gen: v7x
topology: tpu7x:2x2x1
jax: 0.10.0
libtpu: 0.0.40
codegen_flags: <defaults>
</compile_context>

<pallas_src>
import functools

import jax
import jax.numpy as jnp
from jax.experimental import pallas as pl
from jax.experimental.pallas import tpu as pltpu

EPS = 1e-5  # nn.BatchNorm2d default eps


def _vmem_limit_bytes():
    try:
        cap = int(pltpu.get_tpu_info().vmem_capacity_bytes)
    except Exception:
        cap = 64 * 1024 * 1024
    # ~96 MiB on 128-MiB chips (v5e/v6e), ~48 MiB on 64-MiB v7x.
    return max(min(cap * 3 // 4, 100 * 1024 * 1024), 16 * 1024 * 1024)


def _compiler_params(vmem_limit):
    return pltpu.CompilerParams(
        dimension_semantics=("parallel",),
        vmem_limit_bytes=vmem_limit,
    )


def _choose_batch_tile(N, H, W, Cin, Cmid, Cout, vmem_limit):
    """Images per grid step: largest divisor of N that fits the VMEM budget,
    keeps >= 2 grid steps (megacore / DMA-compute overlap) and 8-row blocks.
    Whole-image tiles sidestep the degenerate small-divisor problem of row
    tiling: bt=1 (one full image) is always a valid, reasonably sized tile."""
    per_img = 2 * (H * W * Cmid * 2 + H * W * Cin * 2 + H * W * Cout * 4)   # dbl-buffered blocks
    per_img += (H + 2) * W * Cmid * 4 + H * W * Cmid * 2 + H * W * Cout * 4  # in-kernel values
    budget = vmem_limit // 2
    best = 1
    for bt in range(1, N + 1):
        if N % bt:
            continue
        if N >= 2 and (N // bt) < 2:
            continue                      # keep >= 2 grid steps
        if (bt * H) % 8 != 0 and bt != N:
            continue                      # sublane-aligned row blocks
        if bt * per_img <= budget:
            best = bt
    return best


# ---------------------------------------------------------------------------
# Banded weights: fold the dw (column) taps and the in-row pixel index into the
# matmul.  Wb[dh][iw*Cin+ci, w*Cout+co] = weight[co, ci, dh, dw] with
# dw = w - iw + 1; taps falling outside the row are absent -> implicit zero
# W-padding.  One (W*Cin, W*Cout) matmul per dh replaces 9-tap im2col.
# ---------------------------------------------------------------------------
def _band_3x3(w_oihw, width):
    mats = []
    for dh in range(3):
        m = None
        for dw in range(3):
            blk = jnp.transpose(w_oihw[:, :, dh, dw]).astype(jnp.float32)   # (Cin, Cout)
            term = jnp.kron(jnp.eye(width, k=1 - dw, dtype=jnp.float32), blk)
            m = term if m is None else m + term
        mats.append(m)
    return jnp.stack(mats, axis=0)                                          # (3, W*Cin, W*Cout)


def _band_1x1(w_oi11, width):
    blk = jnp.transpose(w_oi11[:, :, 0, 0]).astype(jnp.float32)             # (Cin, Cout)
    return jnp.kron(jnp.eye(width, dtype=jnp.float32), blk)                 # (W*Cin, W*Cout)


def _lane_tile(vec, width):
    # per-channel vector -> per-lane (1, W*C) row matching the (w, c) lane order
    return jnp.tile(vec.astype(jnp.float32), width).reshape(1, width * vec.shape[0])


# ---------------------------------------------------------------------------
# Kernel A: fused  BN1-apply + ReLU  ->  conv1 (3 banded MXU matmuls)
#           + per-tile BN2 partial sums in the epilogue.   y1 written as bf16.
# ---------------------------------------------------------------------------
def _conv1_kernel(x_ref, s_ref, b_ref, w_ref, y_ref, st_ref, *, bt, H):
    kin = x_ref.shape[-1]
    a = jnp.maximum(x_ref[...].astype(jnp.float32) * s_ref[...] + b_ref[...], 0.0)
    a = a.reshape(bt, H, kin)
    zrow = jnp.zeros((bt, 1, kin), jnp.float32)
    apad = jnp.concatenate([zrow, a, zrow], axis=1).astype(jnp.bfloat16)   # H-halo only
    acc = jnp.zeros(y_ref.shape, jnp.float32)
    for dh in range(3):                                                    # 3 accumulated matmuls
        a_dh = apad[:, dh:dh + H, :].reshape(bt * H, kin)
        acc = acc + jnp.dot(a_dh, w_ref[dh], preferred_element_type=jnp.float32)
    y_ref[...] = acc.astype(y_ref.dtype)                                   # bf16 writeback
    # per-tile, per-(w,c)-lane partial sums for the two-pass BatchNorm2
    s = jnp.sum(acc, axis=0, keepdims=True)
    sq = jnp.sum(acc * acc, axis=0, keepdims=True)
    st_ref[...] = jnp.concatenate([s, sq], axis=0).reshape(st_ref.shape)


def _conv1_call(x2, s1l, b1l, wb1, bt, H, vmem_limit):
    NH, kin = x2.shape
    nmid = wb1.shape[-1]
    T = NH // (bt * H)
    kern = functools.partial(_conv1_kernel, bt=bt, H=H)
    return pl.pallas_call(
        kern,
        out_shape=(jax.ShapeDtypeStruct((NH, nmid), jnp.bfloat16),
                   jax.ShapeDtypeStruct((T, 2, nmid), jnp.float32)),
        grid_spec=pltpu.PrefetchScalarGridSpec(
            num_scalar_prefetch=0,
            grid=(T,),
            in_specs=[pl.BlockSpec((bt * H, kin), lambda i: (i, 0)),
                      pl.BlockSpec((1, kin), lambda i: (0, 0)),
                      pl.BlockSpec((1, kin), lambda i: (0, 0)),
                      pl.BlockSpec(wb1.shape, lambda i: (0, 0, 0))],
            out_specs=(pl.BlockSpec((bt * H, nmid), lambda i: (i, 0)),
                       pl.BlockSpec((1, 2, nmid), lambda i: (i, 0, 0))),
        ),
        compiler_params=_compiler_params(vmem_limit),
    )(x2, s1l, b1l, wb1)


# ---------------------------------------------------------------------------
# Kernel B: fused  BN2-apply + ReLU  ->  conv2 (3 banded MXU matmuls)
#           + 1x1 residual conv (one more matmul)  ->  final f32 output.
# ---------------------------------------------------------------------------
def _conv2_kernel(y1_ref, x_ref, s_ref, b_ref, w_ref, wr_ref, o_ref, *, bt, H):
    kmid = y1_ref.shape[-1]
    a = jnp.maximum(y1_ref[...].astype(jnp.float32) * s_ref[...] + b_ref[...], 0.0)
    a = a.reshape(bt, H, kmid)
    zrow = jnp.zeros((bt, 1, kmid), jnp.float32)
    apad = jnp.concatenate([zrow, a, zrow], axis=1).astype(jnp.bfloat16)
    # residual 1x1 conv (per-pixel matmul via block-diagonal banded weight)
    acc = jnp.dot(x_ref[...], wr_ref[...], preferred_element_type=jnp.float32)
    for dh in range(3):
        a_dh = apad[:, dh:dh + H, :].reshape(bt * H, kmid)
        acc = acc + jnp.dot(a_dh, w_ref[dh], preferred_element_type=jnp.float32)
    o_ref[...] = acc.astype(o_ref.dtype)


def _conv2_call(y1, x2, s2l, b2l, wb2, wrb, bt, H, vmem_limit):
    NH, kmid = y1.shape
    kin = x2.shape[-1]
    nout = wb2.shape[-1]
    T = NH // (bt * H)
    kern = functools.partial(_conv2_kernel, bt=bt, H=H)
    return pl.pallas_call(
        kern,
        out_shape=jax.ShapeDtypeStruct((NH, nout), jnp.float32),
        grid_spec=pltpu.PrefetchScalarGridSpec(
            num_scalar_prefetch=0,
            grid=(T,),
            in_specs=[pl.BlockSpec((bt * H, kmid), lambda i: (i, 0)),
                      pl.BlockSpec((bt * H, kin), lambda i: (i, 0)),
                      pl.BlockSpec((1, kmid), lambda i: (0, 0)),
                      pl.BlockSpec((1, kmid), lambda i: (0, 0)),
                      pl.BlockSpec(wb2.shape, lambda i: (0, 0, 0)),
                      pl.BlockSpec(wrb.shape, lambda i: (0, 0))],
            out_specs=pl.BlockSpec((bt * H, nout), lambda i: (i, 0)),
        ),
        compiler_params=_compiler_params(vmem_limit),
    )(y1, x2, s2l, b2l, wb2, wrb)


# ---------------------------------------------------------------------------
# Full WideResidualBlock forward (residual=True path), PyTorch parameter conv:
#   w1: (Cmid, Cin, 3, 3), w2: (Cout, Cmid, 3, 3), wres: (Cout, Cin, 1, 1)
#   g1,b1: (Cin,)          g2,b2: (Cmid,)
# ---------------------------------------------------------------------------
@jax.jit
def wide_residual_block(x_nchw, params):
    N, Cin, H, W = x_nchw.shape
    Cmid = params["w1"].shape[0]
    Cout = params["w2"].shape[0]
    vmem_limit = _vmem_limit_bytes()
    bt = _choose_batch_tile(N, H, W, Cin, Cmid, Cout, vmem_limit)

    # NCHW -> channels-last, lane-dense (N*H, W*C) slab; bf16 copy feeds both
    # conv kernels while BN1 statistics come from the f32 view (XLA reduction
    # fused with the transpose; no dedicated stats kernel / extra HBM pass).
    x_nhwc = jnp.transpose(x_nchw, (0, 2, 3, 1)).astype(jnp.float32)
    x2 = x_nhwc.reshape(N * H, W * Cin).astype(jnp.bfloat16)

    mean1 = jnp.mean(x_nhwc, axis=(0, 1, 2))
    var1 = jnp.var(x_nhwc, axis=(0, 1, 2))                       # biased, as BatchNorm uses
    inv1 = jax.lax.rsqrt(var1 + EPS)
    scale1 = params["g1"].astype(jnp.float32) * inv1
    shift1 = params["b1"].astype(jnp.float32) - mean1 * scale1

    wb1 = _band_3x3(params["w1"], W).astype(jnp.bfloat16)        # (3, W*Cin, W*Cmid)
    y1, st = _conv1_call(x2, _lane_tile(scale1, W), _lane_tile(shift1, W),
                         wb1, bt, H, vmem_limit)

    # BN2 batch statistics from conv1's per-tile, per-lane partial sums.
    # TODO(synk): E[x^2]-E[x]^2 in f32 is fine at these sizes; for very large
    # N*H*W switch to a centered (Chan/Welford) combine of the tile partials.
    cnt = N * H * W
    tot = jnp.sum(st, axis=0).reshape(2, W, Cmid).sum(axis=1)    # (2, Cmid)
    mean2 = tot[0] / cnt
    var2 = jnp.maximum(tot[1] / cnt - mean2 * mean2, 0.0)
    inv2 = jax.lax.rsqrt(var2 + EPS)
    scale2 = params["g2"].astype(jnp.float32) * inv2
    shift2 = params["b2"].astype(jnp.float32) - mean2 * scale2

    wb2 = _band_3x3(params["w2"], W).astype(jnp.bfloat16)        # (3, W*Cmid, W*Cout)
    # residual kept in the same bf16 path as the conv operands (dominant error
    # is the bf16 conv taps; covered by the test tolerance).
    wrb = _band_1x1(params["wres"], W).astype(jnp.bfloat16)      # (W*Cin, W*Cout)
    out2 = _conv2_call(y1, x2, _lane_tile(scale2, W), _lane_tile(shift2, W),
                       wb2, wrb, bt, H, vmem_limit)              # (N*H, W*Cout) f32

    return jnp.transpose(out2.reshape(N, H, W, Cout), (0, 3, 1, 2))


# ---------------------------------------------------------------------------
# Pure-JAX f32 reference (same math, NCHW) for the correctness check.
# ---------------------------------------------------------------------------
def reference_forward(x, params):
    def bn(z, g, b):
        mean = jnp.mean(z, axis=(0, 2, 3), keepdims=True)
        var = jnp.mean((z - mean) ** 2, axis=(0, 2, 3), keepdims=True)
        return ((z - mean) * jax.lax.rsqrt(var + EPS)
                * g.reshape(1, -1, 1, 1) + b.reshape(1, -1, 1, 1))

    conv = functools.partial(jax.lax.conv_general_dilated,
                             window_strides=(1, 1),
                             dimension_numbers=("NCHW", "OIHW", "NCHW"))
    res = conv(x, params["wres"], padding=[(0, 0), (0, 0)])
    out = conv(jax.nn.relu(bn(x, params["g1"], params["b1"])),
               params["w1"], padding=[(1, 1), (1, 1)])
    out = conv(jax.nn.relu(bn(out, params["g2"], params["b2"])),
               params["w2"], padding=[(1, 1), (1, 1)])
    return out + res


if __name__ == "__main__":
    N, Cin, H, W = 2, 4, 16, 16
    out_channels = 8
    expansion_factor = 2
    Cmid = Cin * expansion_factor     # mid_channels=None -> in_channels * expansion

    key = jax.random.PRNGKey(0)
    ks = jax.random.split(key, 9)
    x = jax.random.normal(ks[0], (N, Cin, H, W), jnp.float32)

    params = {
        "g1": 1.0 + 0.1 * jax.random.normal(ks[1], (Cin,), jnp.float32),
        "b1": 0.1 * jax.random.normal(ks[2], (Cin,), jnp.float32),
        "w1": 0.3 * jax.random.normal(ks[3], (Cmid, Cin, 3, 3), jnp.float32),
        "g2": 1.0 + 0.1 * jax.random.normal(ks[4], (Cmid,), jnp.float32),
        "b2": 0.1 * jax.random.normal(ks[5], (Cmid,), jnp.float32),
        "w2": 0.3 * jax.random.normal(ks[6], (out_channels, Cmid, 3, 3), jnp.float32),
        "wres": 0.3 * jax.random.normal(ks[7], (out_channels, Cin, 1, 1), jnp.float32),
    }
    # TODO(synk): BatchNorm running_mean/var buffer updates are training-only
    # side effects and do not affect the forward output; they are not modeled.

    # Tolerance sized for bf16 MXU operands through two 3x3 convs (the residual
    # branch is also bf16); f32 math agreed to <1e-5 before the bf16 casts.
    TOL = 7.5e-2

    out = jax.block_until_ready(wide_residual_block(x, params))
    ref = reference_forward(x, params)
    assert out.shape == (N, out_channels, H, W)
    err = float(jnp.max(jnp.abs(out - ref)))
    assert err < TOL, f"mismatch vs reference (N=2): {err}"

    # Larger batch -> exercises bt=2 tiles while keeping >=2 parallel grid steps.
    x4 = jax.random.normal(ks[8], (4, Cin, H, W), jnp.float32)
    out4 = jax.block_until_ready(wide_residual_block(x4, params))
    err4 = float(jnp.max(jnp.abs(out4 - reference_forward(x4, params))))
    assert err4 < TOL, f"mismatch vs reference (N=4): {err4}"

    print("KERNEL_OK")
</pallas_src>

<mosaic_0001>
module attributes {stable_mosaic.version = 11 : i64} {
  func.func @_conv1_kernel(%arg0: i32, %arg1: memref<16x64xbf16, #tpu.memory_space<vmem>>, %arg2: memref<1x64xf32, #tpu.memory_space<vmem>>, %arg3: memref<1x64xf32, #tpu.memory_space<vmem>>, %arg4: memref<3x64x128xbf16, #tpu.memory_space<vmem>>, %arg5: memref<16x128xbf16, #tpu.memory_space<vmem>>, %arg6: memref<1x2x128xf32, #tpu.memory_space<vmem>>) attributes {dimension_semantics = [#tpu.dimension_semantics<parallel>], iteration_bounds = array<i64: 2>, scalar_prefetch = 0 : i64, scratch_operands = 0 : i64, tpu.core_type = #tpu.core_type<tc>, window_params = [{transform_indices = @transform_0, window_bounds = array<i64: 16, 64>}, {pipeline_mode = #tpu.pipeline_mode<synchronous>, transform_indices = @transform_1, window_bounds = array<i64: 1, 64>}, {pipeline_mode = #tpu.pipeline_mode<synchronous>, transform_indices = @transform_2, window_bounds = array<i64: 1, 64>}, {pipeline_mode = #tpu.pipeline_mode<synchronous>, transform_indices = @transform_3, window_bounds = array<i64: 3, 64, 128>}, {transform_indices = @transform_4, window_bounds = array<i64: 16, 128>}, {transform_indices = @transform_5, window_bounds = array<i64: 1, 2, 128>}]} {
    %c0 = arith.constant 0 : index
    %c0_0 = arith.constant 0 : index
    %0 = vector.load %arg1[%c0, %c0_0] : memref<16x64xbf16, #tpu.memory_space<vmem>>, vector<16x64xbf16>
    %1 = arith.extf %0 : vector<16x64xbf16> to vector<16x64xf32>
    %c0_1 = arith.constant 0 : index
    %c0_2 = arith.constant 0 : index
    %2 = vector.load %arg2[%c0_1, %c0_2] : memref<1x64xf32, #tpu.memory_space<vmem>>, vector<1x64xf32>
    %3 = vector.broadcast %2 : vector<1x64xf32> to vector<16x64xf32>
    %4 = arith.mulf %1, %3 : vector<16x64xf32>
    %c0_3 = arith.constant 0 : index
    %c0_4 = arith.constant 0 : index
    %5 = vector.load %arg3[%c0_3, %c0_4] : memref<1x64xf32, #tpu.memory_space<vmem>>, vector<1x64xf32>
    %6 = vector.broadcast %5 : vector<1x64xf32> to vector<16x64xf32>
    %7 = arith.addf %4, %6 : vector<16x64xf32>
    %cst = arith.constant 0.000000e+00 : f32
    %8 = vector.broadcast %cst : f32 to vector<16x64xf32>
    %9 = arith.maximumf %7, %8 : vector<16x64xf32>
    %10 = vector.shape_cast %9 : vector<16x64xf32> to vector<1x16x64xf32>
    %cst_5 = arith.constant 0.000000e+00 : f32
    %11 = vector.broadcast %cst_5 : f32 to vector<1x1x64xf32>
    %12 = tpu.concatenate %11, %10, %11 in 1 : vector<1x1x64xf32>, vector<1x16x64xf32>, vector<1x1x64xf32> -> vector<1x18x64xf32>
    %13 = arith.truncf %12 : vector<1x18x64xf32> to vector<1x18x64xbf16>
    %cst_6 = arith.constant 0.000000e+00 : f32
    %14 = vector.broadcast %cst_6 : f32 to vector<16x128xf32>
    %15 = vector.extract_strided_slice %13 {offsets = [0, 0, 0], sizes = [1, 16, 64], strides = [1, 1, 1]} : vector<1x18x64xbf16> to vector<1x16x64xbf16>
    %16 = vector.shape_cast %15 : vector<1x16x64xbf16> to vector<16x64xbf16>
    %c0_7 = arith.constant 0 : index
    %c0_8 = arith.constant 0 : index
    %c0_9 = arith.constant 0 : index
    %17 = vector.load %arg4[%c0_7, %c0_8, %c0_9] : memref<3x64x128xbf16, #tpu.memory_space<vmem>>, vector<1x64x128xbf16>
    %18 = vector.shape_cast %17 : vector<1x64x128xbf16> to vector<64x128xbf16>
    %cst_10 = arith.constant dense<0.000000e+00> : vector<16x128xf32>
    %19 = tpu.matmul %16, %18, %cst_10 {dimension_numbers = #tpu.dot_dimension_numbers<[1], [0], [0], [1], [0, 0, 1, 1], [], []>} : vector<16x64xbf16>, vector<64x128xbf16>, vector<16x128xf32> -> vector<16x128xf32>
    %20 = arith.addf %14, %19 : vector<16x128xf32>
    %21 = vector.extract_strided_slice %13 {offsets = [0, 1, 0], sizes = [1, 16, 64], strides = [1, 1, 1]} : vector<1x18x64xbf16> to vector<1x16x64xbf16>
    %22 = vector.shape_cast %21 : vector<1x16x64xbf16> to vector<16x64xbf16>
    %c1 = arith.constant 1 : index
    %c0_11 = arith.constant 0 : index
    %c0_12 = arith.constant 0 : index
    %23 = vector.load %arg4[%c1, %c0_11, %c0_12] : memref<3x64x128xbf16, #tpu.memory_space<vmem>>, vector<1x64x128xbf16>
    %24 = vector.shape_cast %23 : vector<1x64x128xbf16> to vector<64x128xbf16>
    %cst_13 = arith.constant dense<0.000000e+00> : vector<16x128xf32>
    %25 = tpu.matmul %22, %24, %cst_13 {dimension_numbers = #tpu.dot_dimension_numbers<[1], [0], [0], [1], [0, 0, 1, 1], [], []>} : vector<16x64xbf16>, vector<64x128xbf16>, vector<16x128xf32> -> vector<16x128xf32>
    %26 = arith.addf %20, %25 : vector<16x128xf32>
    %27 = vector.extract_strided_slice %13 {offsets = [0, 2, 0], sizes = [1, 16, 64], strides = [1, 1, 1]} : vector<1x18x64xbf16> to vector<1x16x64xbf16>
    %28 = vector.shape_cast %27 : vector<1x16x64xbf16> to vector<16x64xbf16>
    %c2 = arith.constant 2 : index
    %c0_14 = arith.constant 0 : index
    %c0_15 = arith.constant 0 : index
    %29 = vector.load %arg4[%c2, %c0_14, %c0_15] : memref<3x64x128xbf16, #tpu.memory_space<vmem>>, vector<1x64x128xbf16>
    %30 = vector.shape_cast %29 : vector<1x64x128xbf16> to vector<64x128xbf16>
    %cst_16 = arith.constant dense<0.000000e+00> : vector<16x128xf32>
    %31 = tpu.matmul %28, %30, %cst_16 {dimension_numbers = #tpu.dot_dimension_numbers<[1], [0], [0], [1], [0, 0, 1, 1], [], []>} : vector<16x64xbf16>, vector<64x128xbf16>, vector<16x128xf32> -> vector<16x128xf32>
    %32 = arith.addf %26, %31 : vector<16x128xf32>
    %33 = arith.truncf %32 : vector<16x128xf32> to vector<16x128xbf16>
    %c0_17 = arith.constant 0 : index
    %c0_18 = arith.constant 0 : index
    %34 = vector.load %arg5[%c0_17, %c0_18] : memref<16x128xbf16, #tpu.memory_space<vmem>>, vector<16x128xbf16>
    tpu.vector_store %arg5[%c0_17, %c0_18], %33 {strides = array<i32>} : memref<16x128xbf16, #tpu.memory_space<vmem>>, vector<16x128xbf16>,
    %cst_19 = arith.constant dense<0.000000e+00> : vector<128xf32>
    %35 = vector.multi_reduction <add>, %32, %cst_19 [0] : vector<16x128xf32> to vector<128xf32>
    %36 = vector.shape_cast %35 : vector<128xf32> to vector<1x128xf32>
    %37 = arith.mulf %32, %32 : vector<16x128xf32>
    %cst_20 = arith.constant dense<0.000000e+00> : vector<128xf32>
    %38 = vector.multi_reduction <add>, %37, %cst_20 [0] : vector<16x128xf32> to vector<128xf32>
    %39 = vector.shape_cast %38 : vector<128xf32> to vector<1x128xf32>
    %40 = tpu.concatenate %36, %39 in 0 : vector<1x128xf32>, vector<1x128xf32> -> vector<2x128xf32>
    %41 = vector.shape_cast %40 : vector<2x128xf32> to vector<1x2x128xf32>
    %c0_21 = arith.constant 0 : index
    %c0_22 = arith.constant 0 : index
    %c0_23 = arith.constant 0 : index
    %42 = vector.load %arg6[%c0_21, %c0_22, %c0_23] : memref<1x2x128xf32, #tpu.memory_space<vmem>>, vector<1x2x128xf32>
    tpu.vector_store %arg6[%c0_21, %c0_22, %c0_23], %41 {strides = array<i32>} : memref<1x2x128xf32, #tpu.memory_space<vmem>>, vector<1x2x128xf32>,
    return
  }
  func.func @transform_0(%arg0: i32) -> (i32, i32) {
    %c0_i32 = arith.constant 0 : i32
    %c0_i32_0 = arith.constant 0 : i32
    return %arg0, %c0_i32 : i32, i32
  }
  func.func @transform_1(%arg0: i32) -> (i32, i32) {
    %c0_i32 = arith.constant 0 : i32
    %c0_i32_0 = arith.constant 0 : i32
    %c0_i32_1 = arith.constant 0 : i32
    return %c0_i32, %c0_i32_0 : i32, i32
  }
  func.func @transform_2(%arg0: i32) -> (i32, i32) {
    %c0_i32 = arith.constant 0 : i32
    %c0_i32_0 = arith.constant 0 : i32
    %c0_i32_1 = arith.constant 0 : i32
    return %c0_i32, %c0_i32_0 : i32, i32
  }
  func.func @transform_3(%arg0: i32) -> (i32, i32, i32) {
    %c0_i32 = arith.constant 0 : i32
    %c0_i32_0 = arith.constant 0 : i32
    %c0_i32_1 = arith.constant 0 : i32
    %c0_i32_2 = arith.constant 0 : i32
    return %c0_i32, %c0_i32_0, %c0_i32_1 : i32, i32, i32
  }
  func.func @transform_4(%arg0: i32) -> (i32, i32) {
    %c0_i32 = arith.constant 0 : i32
    %c0_i32_0 = arith.constant 0 : i32
    return %arg0, %c0_i32 : i32, i32
  }
  func.func @transform_5(%arg0: i32) -> (i32, i32, i32) {
    %c0_i32 = arith.constant 0 : i32
    %c0_i32_0 = arith.constant 0 : i32
    %c0_i32_1 = arith.constant 0 : i32
    return %arg0, %c0_i32, %c0_i32_0 : i32, i32, i32
  }
}

module attributes {stable_mosaic.version = 11 : i64} {
  func.func @_conv2_kernel(%arg0: i32, %arg1: memref<16x128xbf16, #tpu.memory_space<vmem>>, %arg2: memref<16x64xbf16, #tpu.memory_space<vmem>>, %arg3: memref<1x128xf32, #tpu.memory_space<vmem>>, %arg4: memref<1x128xf32, #tpu.memory_space<vmem>>, %arg5: memref<3x128x128xbf16, #tpu.memory_space<vmem>>, %arg6: memref<64x128xbf16, #tpu.memory_space<vmem>>, %arg7: memref<16x128xf32, #tpu.memory_space<vmem>>) attributes {dimension_semantics = [#tpu.dimension_semantics<parallel>], iteration_bounds = array<i64: 2>, scalar_prefetch = 0 : i64, scratch_operands = 0 : i64, tpu.core_type = #tpu.core_type<tc>, window_params = [{transform_indices = @transform_0, window_bounds = array<i64: 16, 128>}, {transform_indices = @transform_1, window_bounds = array<i64: 16, 64>}, {pipeline_mode = #tpu.pipeline_mode<synchronous>, transform_indices = @transform_2, window_bounds = array<i64: 1, 128>}, {pipeline_mode = #tpu.pipeline_mode<synchronous>, transform_indices = @transform_3, window_bounds = array<i64: 1, 128>}, {pipeline_mode = #tpu.pipeline_mode<synchronous>, transform_indices = @transform_4, window_bounds = array<i64: 3, 128, 128>}, {pipeline_mode = #tpu.pipeline_mode<synchronous>, transform_indices = @transform_5, window_bounds = array<i64: 64, 128>}, {transform_indices = @transform_6, window_bounds = array<i64: 16, 128>}]} {
    %c0 = arith.constant 0 : index
    %c0_0 = arith.constant 0 : index
    %0 = vector.load %arg1[%c0, %c0_0] : memref<16x128xbf16, #tpu.memory_space<vmem>>, vector<16x128xbf16>
    %1 = arith.extf %0 : vector<16x128xbf16> to vector<16x128xf32>
    %c0_1 = arith.constant 0 : index
    %c0_2 = arith.constant 0 : index
    %2 = vector.load %arg3[%c0_1, %c0_2] : memref<1x128xf32, #tpu.memory_space<vmem>>, vector<1x128xf32>
    %3 = vector.broadcast %2 : vector<1x128xf32> to vector<16x128xf32>
    %4 = arith.mulf %1, %3 : vector<16x128xf32>
    %c0_3 = arith.constant 0 : index
    %c0_4 = arith.constant 0 : index
    %5 = vector.load %arg4[%c0_3, %c0_4] : memref<1x128xf32, #tpu.memory_space<vmem>>, vector<1x128xf32>
    %6 = vector.broadcast %5 : vector<1x128xf32> to vector<16x128xf32>
    %7 = arith.addf %4, %6 : vector<16x128xf32>
    %cst = arith.constant 0.000000e+00 : f32
    %8 = vector.broadcast %cst : f32 to vector<16x128xf32>
    %9 = arith.maximumf %7, %8 : vector<16x128xf32>
    %10 = vector.shape_cast %9 : vector<16x128xf32> to vector<1x16x128xf32>
    %cst_5 = arith.constant 0.000000e+00 : f32
    %11 = vector.broadcast %cst_5 : f32 to vector<1x1x128xf32>
    %12 = tpu.concatenate %11, %10, %11 in 1 : vector<1x1x128xf32>, vector<1x16x128xf32>, vector<1x1x128xf32> -> vector<1x18x128xf32>
    %13 = arith.truncf %12 : vector<1x18x128xf32> to vector<1x18x128xbf16>
    %c0_6 = arith.constant 0 : index
    %c0_7 = arith.constant 0 : index
    %14 = vector.load %arg2[%c0_6, %c0_7] : memref<16x64xbf16, #tpu.memory_space<vmem>>, vector<16x64xbf16>
    %c0_8 = arith.constant 0 : index
    %c0_9 = arith.constant 0 : index
    %15 = vector.load %arg6[%c0_8, %c0_9] : memref<64x128xbf16, #tpu.memory_space<vmem>>, vector<64x128xbf16>
    %cst_10 = arith.constant dense<0.000000e+00> : vector<16x128xf32>
    %16 = tpu.matmul %14, %15, %cst_10 {dimension_numbers = #tpu.dot_dimension_numbers<[1], [0], [0], [1], [0, 0, 1, 1], [], []>} : vector<16x64xbf16>, vector<64x128xbf16>, vector<16x128xf32> -> vector<16x128xf32>
    %17 = vector.extract_strided_slice %13 {offsets = [0, 0, 0], sizes = [1, 16, 128], strides = [1, 1, 1]} : vector<1x18x128xbf16> to vector<1x16x128xbf16>
    %18 = vector.shape_cast %17 : vector<1x16x128xbf16> to vector<16x128xbf16>
    %c0_11 = arith.constant 0 : index
    %c0_12 = arith.constant 0 : index
    %c0_13 = arith.constant 0 : index
    %19 = vector.load %arg5[%c0_11, %c0_12, %c0_13] : memref<3x128x128xbf16, #tpu.memory_space<vmem>>, vector<1x128x128xbf16>
    %20 = vector.shape_cast %19 : vector<1x128x128xbf16> to vector<128x128xbf16>
    %cst_14 = arith.constant dense<0.000000e+00> : vector<16x128xf32>
    %21 = tpu.matmul %18, %20, %cst_14 {dimension_numbers = #tpu.dot_dimension_numbers<[1], [0], [0], [1], [0, 0, 1, 1], [], []>} : vector<16x128xbf16>, vector<128x128xbf16>, vector<16x128xf32> -> vector<16x128xf32>
    %22 = arith.addf %16, %21 : vector<16x128xf32>
    %23 = vector.extract_strided_slice %13 {offsets = [0, 1, 0], sizes = [1, 16, 128], strides = [1, 1, 1]} : vector<1x18x128xbf16> to vector<1x16x128xbf16>
    %24 = vector.shape_cast %23 : vector<1x16x128xbf16> to vector<16x128xbf16>
    %c1 = arith.constant 1 : index
    %c0_15 = arith.constant 0 : index
    %c0_16 = arith.constant 0 : index
    %25 = vector.load %arg5[%c1, %c0_15, %c0_16] : memref<3x128x128xbf16, #tpu.memory_space<vmem>>, vector<1x128x128xbf16>
    %26 = vector.shape_cast %25 : vector<1x128x128xbf16> to vector<128x128xbf16>
    %cst_17 = arith.constant dense<0.000000e+00> : vector<16x128xf32>
    %27 = tpu.matmul %24, %26, %cst_17 {dimension_numbers = #tpu.dot_dimension_numbers<[1], [0], [0], [1], [0, 0, 1, 1], [], []>} : vector<16x128xbf16>, vector<128x128xbf16>, vector<16x128xf32> -> vector<16x128xf32>
    %28 = arith.addf %22, %27 : vector<16x128xf32>
    %29 = vector.extract_strided_slice %13 {offsets = [0, 2, 0], sizes = [1, 16, 128], strides = [1, 1, 1]} : vector<1x18x128xbf16> to vector<1x16x128xbf16>
    %30 = vector.shape_cast %29 : vector<1x16x128xbf16> to vector<16x128xbf16>
    %c2 = arith.constant 2 : index
    %c0_18 = arith.constant 0 : index
    %c0_19 = arith.constant 0 : index
    %31 = vector.load %arg5[%c2, %c0_18, %c0_19] : memref<3x128x128xbf16, #tpu.memory_space<vmem>>, vector<1x128x128xbf16>
    %32 = vector.shape_cast %31 : vector<1x128x128xbf16> to vector<128x128xbf16>
    %cst_20 = arith.constant dense<0.000000e+00> : vector<16x128xf32>
    %33 = tpu.matmul %30, %32, %cst_20 {dimension_numbers = #tpu.dot_dimension_numbers<[1], [0], [0], [1], [0, 0, 1, 1], [], []>} : vector<16x128xbf16>, vector<128x128xbf16>, vector<16x128xf32> -> vector<16x128xf32>
    %34 = arith.addf %28, %33 : vector<16x128xf32>
    %c0_21 = arith.constant 0 : index
    %c0_22 = arith.constant 0 : index
    %35 = vector.load %arg7[%c0_21, %c0_22] : memref<16x128xf32, #tpu.memory_space<vmem>>, vector<16x128xf32>
    tpu.vector_store %arg7[%c0_21, %c0_22], %34 {strides = array<i32>} : memref<16x128xf32, #tpu.memory_space<vmem>>, vector<16x128xf32>,
    return
  }
  func.func @transform_0(%arg0: i32) -> (i32, i32) {
    %c0_i32 = arith.constant 0 : i32
    %c0_i32_0 = arith.constant 0 : i32
    return %arg0, %c0_i32 : i32, i32
  }
  func.func @transform_1(%arg0: i32) -> (i32, i32) {
    %c0_i32 = arith.constant 0 : i32
    %c0_i32_0 = arith.constant 0 : i32
    return %arg0, %c0_i32 : i32, i32
  }
  func.func @transform_2(%arg0: i32) -> (i32, i32) {
    %c0_i32 = arith.constant 0 : i32
    %c0_i32_0 = arith.constant 0 : i32
    %c0_i32_1 = arith.constant 0 : i32
    return %c0_i32, %c0_i32_0 : i32, i32
  }
  func.func @transform_3(%arg0: i32) -> (i32, i32) {
    %c0_i32 = arith.constant 0 : i32
    %c0_i32_0 = arith.constant 0 : i32
    %c0_i32_1 = arith.constant 0 : i32
    return %c0_i32, %c0_i32_0 : i32, i32
  }
  func.func @transform_4(%arg0: i32) -> (i32, i32, i32) {
    %c0_i32 = arith.constant 0 : i32
    %c0_i32_0 = arith.constant 0 : i32
    %c0_i32_1 = arith.constant 0 : i32
    %c0_i32_2 = arith.constant 0 : i32
    return %c0_i32, %c0_i32_0, %c0_i32_1 : i32, i32, i32
  }
  func.func @transform_5(%arg0: i32) -> (i32, i32) {
    %c0_i32 = arith.constant 0 : i32
    %c0_i32_0 = arith.constant 0 : i32
    %c0_i32_1 = arith.constant 0 : i32
    return %c0_i32, %c0_i32_0 : i32, i32
  }
  func.func @transform_6(%arg0: i32) -> (i32, i32) {
    %c0_i32 = arith.constant 0 : i32
    %c0_i32_0 = arith.constant 0 : i32
    return %arg0, %c0_i32 : i32, i32
  }
}

</mosaic_0001>

<bundles_post_ra>
// kernel: tile.23
= control target key start
LH: loop header
LB: loop body
LE: loop exit
PB: predicated region body
PF: predicated region fallthrough
CT: control target
= control target key end

     0   :  { %s28_s0 = inlined_call_operand.vmem [shape: f32[4], index: 0, kind: input, shape index: {}]   ;;  %s29_s1 = inlined_call_operand.vmem [shape: f32[16,4], index: 1, kind: output, shape index: {}]  }
   0x1   :  { %v4_v0 = vld [vmem:[%s28_s0] ss:$0 sm:$0xff] }
   0x2   :  { %5 = vst [vmem:[%s29_s1] sm:$0xff] %v4_v0  ;;  %8 = vst [vmem:[%s29_s1 + $0x8] sm:$0xff] %v4_v0 }

// kernel: tile.24
= control target key start
LH: loop header
LB: loop body
LE: loop exit
PB: predicated region body
PF: predicated region fallthrough
CT: control target
= control target key end

     0   :  { %s131_s10 = smov 60   ;;  %s132_s11 = smov 52   ;;  %vm3_vm0 = vcmask 31744   ;;  %vm9_vm1 = vcmask 523744   ;;  %vm15_vm2 = vcmask 490944   ;;  %vm21_vm3 = vcmask 458144   ;;  %s207_s0 = inlined_call_operand.vmem [shape: f32[16,4], index: 0, kind: input, shape index: {}]   ;;  %s208_s1 = inlined_call_operand.vmem [shape: f32[1,64], index: 1, kind: output, shape index: {}]  }
   0x1   :  { %v101_v0 = vld [vmem:[%s207_s0 + $0xf] sm:$0x1]   ;;  %v103_v1 = vld [vmem:[%s207_s0 + $0xd] sm:$0x1]   ;;  %v102_v2 = vld [vmem:[%s207_s0 + $0xe] sm:$0x1]  }
   0x2   :  { %7 = vrot.lane.b32.xlu0 %v101_v0, %s131_s10  ;;  %19 = vrot.lane.b32.xlu1 %v103_v1, %s132_s11  ;;  %v104_v3 = vld [vmem:[%s207_s0 + $0xc] sm:$0x1]   ;;  %s133_s16 = smov 56   ;;  %s134_s17 = smov 48   ;;  %v105_v4 = vld [vmem:[%s207_s0 + $0xb] sm:$0x1]  }
   0x3   :  { %v106_v5 = vld [vmem:[%s207_s0 + $0xa] sm:$0x1]   ;;  %v2_v6 = vld [vmem:[%s207_s0] sm:$0x1]   ;;  %s135_s24 = smov 44   ;;  %s136_s25 = smov 40  }
   0x4   :  { %4 = vst.msk [vmem:[#allocation0] sm:$0x1] %vm3_vm0, %v2_v6   ;;  %v107_v7 = vld [vmem:[%s207_s0 + $0x9] sm:$0x1]   ;;  %v108_v8 = vld [vmem:[%s207_s0 + $0x8] sm:$0x1]  }
   0x5   :  { %s137_s30 = smov 36   ;;  %s138_s2 = smov 32   ;;  %v109_v9 = vld [vmem:[%s207_s0 + $0x7] sm:$0x1]   ;;  %v110_v10 = vld [vmem:[%s207_s0 + $0x6] sm:$0x1]  }
   0x6   :  { %13 = vrot.lane.b32.xlu0 %v102_v2, %s133_s16  ;;  %25 = vrot.lane.b32.xlu1 %v104_v3, %s134_s17  ;;  %s139_s7 = smov 28   ;;  %s140_s8 = smov 24   ;;  %v111_v11 = vld [vmem:[%s207_s0 + $0x5] sm:$0x1]   ;;  %v112_v12 = vld [vmem:[%s207_s0 + $0x4] sm:$0x1]  }
   0x7   :  { %s141_s13 = smov 20   ;;  %s142_s14 = smov 16   ;;  %v113_v13 = vld [vmem:[%s207_s0 + $0x3] sm:$0x1]   ;;  %v114_v14 = vld [vmem:[%s207_s0 + $0x2] sm:$0x1]  }
   0x8   :  { %s143_s19 = smov 12   ;;  %s144_s20 = smov 8   ;;  %v115_v15 = vld [vmem:[%s207_s0 + $0x1] sm:$0x1]   ;;  %vm27_vm4 = vcmask 425344   ;;  %vm33_vm5 = vcmask 392544  }
   0x9   :  { %s145_s0 = smov 4   ;;  %vm39_vm6 = vcmask 359744   ;;  %vm45_vm7 = vcmask 326944   ;;  %vm51_vm8 = vcmask 294144   ;;  %vm57_vm9 = vcmask 261344  }
   0xa   :  { %31 = vrot.lane.b32.xlu0 %v105_v4, %s135_s24  ;;  %37 = vrot.lane.b32.xlu1 %v106_v5, %s136_s25  ;;  %vm63_vm10 = vcmask 228544   ;;  %vm69_vm11 = vcmask 195744   ;;  %vm75_vm12 = vcmask 162944   ;;  %vm81_vm13 = vcmask 130144  }
   0xb   :  { %vm87_vm14 = vcmask 97344   ;;  %vm93_vm15 = vcmask 64544  }
   0xe   :  { %43 = vrot.lane.b32.xlu0 %v107_v7, %s137_s30  ;;  %49 = vrot.lane.b32.xlu1 %v108_v8, %s138_s2 }
  0x12   :  { %55 = vrot.lane.b32.xlu0 %v109_v9, %s139_s7  ;;  %61 = vrot.lane.b32.xlu1 %v110_v10, %s140_s8 }
  0x16   :  { %67 = vrot.lane.b32.xlu0 %v111_v11, %s141_s13  ;;  %73 = vrot.lane.b32.xlu1 %v112_v12, %s142_s14 }
  0x1a   :  { %79 = vrot.lane.b32.xlu0 %v113_v13, %s143_s19  ;;  %85 = vrot.lane.b32.xlu1 %v114_v14, %s144_s20 }
  0x1e   :  { %91 = vrot.lane.b32.xlu0 %v115_v15, %s145_s0 }
  0x74   :  { %v8_v16 = vpop.permute.xlu0 %7   ;;  %v20_v17 = vpop.permute.xlu1 %19  }
  0x75   :  { %10 = vst.msk [vmem:[#allocation0] sm:$0x1] %vm9_vm1, %v8_v16  }
  0x78   :  { %v14_v18 = vpop.permute.xlu0 %13   ;;  %v26_v19 = vpop.permute.xlu1 %25  }
  0x79   :  { %16 = vst.msk [vmem:[#allocation0] sm:$0x1] %vm15_vm2, %v14_v18  }
  0x7a   :  { %22 = vst.msk [vmem:[#allocation0] sm:$0x1] %vm21_vm3, %v20_v17  }
  0x7b   :  { %28 = vst.msk [vmem:[#allocation0] sm:$0x1] %vm27_vm4, %v26_v19  }
  0x7c   :  { %v32_v20 = vpop.permute.xlu0 %31   ;;  %v38_v21 = vpop.permute.xlu1 %37  }
  0x7d   :  { %34 = vst.msk [vmem:[#allocation0] sm:$0x1] %vm33_vm5, %v32_v20  }
  0x7e   :  { %40 = vst.msk [vmem:[#allocation0] sm:$0x1] %vm39_vm6, %v38_v21  }
  0x80   :  { %v44_v22 = vpop.permute.xlu0 %43   ;;  %v50_v23 = vpop.permute.xlu1 %49  }
  0x81   :  { %46 = vst.msk [vmem:[#allocation0] sm:$0x1] %vm45_vm7, %v44_v22  }
  0x82   :  { %52 = vst.msk [vmem:[#allocation0] sm:$0x1] %vm51_vm8, %v50_v23  }
  0x84   :  { %v56_v24 = vpop.permute.xlu0 %55   ;;  %v62_v25 = vpop.permute.xlu1 %61  }
  0x85   :  { %58 = vst.msk [vmem:[#allocation0] sm:$0x1] %vm57_vm9, %v56_v24  }
  0x86   :  { %64 = vst.msk [vmem:[#allocation0] sm:$0x1] %vm63_vm10, %v62_v25  }
  0x88   :  { %v68_v26 = vpop.permute.xlu0 %67   ;;  %v74_v27 = vpop.permute.xlu1 %73  }
  0x89   :  { %70 = vst.msk [vmem:[#allocation0] sm:$0x1] %vm69_vm11, %v68_v26  }
  0x8a   :  { %76 = vst.msk [vmem:[#allocation0] sm:$0x1] %vm75_vm12, %v74_v27  }
  0x8c   :  { %v80_v28 = vpop.permute.xlu0 %79   ;;  %v86_v29 = vpop.permute.xlu1 %85  }
  0x8d   :  { %82 = vst.msk [vmem:[#allocation0] sm:$0x1] %vm81_vm13, %v80_v28  }
  0x8e   :  { %88 = vst.msk [vmem:[#allocation0] sm:$0x1] %vm87_vm14, %v86_v29  }
  0x90   :  { %v92_v30 = vpop.permute.xlu0 %91  }
  0x91   :  { %94 = vst.msk [vmem:[#allocation0] sm:$0x1] %vm93_vm15, %v92_v30  }
  0x98   :  { %v98_v31 = vld [vmem:[#allocation0] sm:$0x1] }
  0x99   :  { %100 = vst [vmem:[%s208_s1] sm:$0x1] %v98_v31 }

// kernel: tile.33
= control target key start
LH: loop header
LB: loop body
LE: loop exit
PB: predicated region body
PF: predicated region fallthrough
CT: control target
= control target key end

     0   :  { %s28_s0 = inlined_call_operand.vmem [shape: f32[8], index: 0, kind: input, shape index: {}]   ;;  %s29_s1 = inlined_call_operand.vmem [shape: f32[16,8], index: 1, kind: output, shape index: {}]  }
   0x1   :  { %v4_v0 = vld [vmem:[%s28_s0] ss:$0 sm:$0xff] }
   0x2   :  { %5 = vst [vmem:[%s29_s1] sm:$0xff] %v4_v0  ;;  %8 = vst [vmem:[%s29_s1 + $0x8] sm:$0xff] %v4_v0 }

// kernel: tile.34
= control target key start
LH: loop header
LB: loop body
LE: loop exit
PB: predicated region body
PF: predicated region fallthrough
CT: control target
= control target key end

     0   :  { %s131_s10 = smov 120   ;;  %s132_s11 = smov 104   ;;  %vm3_vm0 = vcmask 64512   ;;  %vm9_vm1 = vcmask 1048512   ;;  %vm15_vm2 = vcmask 982912   ;;  %vm21_vm3 = vcmask 917312   ;;  %s207_s0 = inlined_call_operand.vmem [shape: f32[16,8], index: 0, kind: input, shape index: {}]   ;;  %s208_s1 = inlined_call_operand.vmem [shape: f32[1,128], index: 1, kind: output, shape index: {}]  }
   0x1   :  { %v101_v0 = vld [vmem:[%s207_s0 + $0xf] sm:$0x1]   ;;  %v103_v1 = vld [vmem:[%s207_s0 + $0xd] sm:$0x1]   ;;  %v102_v2 = vld [vmem:[%s207_s0 + $0xe] sm:$0x1]  }
   0x2   :  { %7 = vrot.lane.b32.xlu0 %v101_v0, %s131_s10  ;;  %19 = vrot.lane.b32.xlu1 %v103_v1, %s132_s11  ;;  %v104_v3 = vld [vmem:[%s207_s0 + $0xc] sm:$0x1]   ;;  %s133_s16 = smov 112   ;;  %s134_s17 = smov 96   ;;  %v105_v4 = vld [vmem:[%s207_s0 + $0xb] sm:$0x1]  }
   0x3   :  { %v106_v5 = vld [vmem:[%s207_s0 + $0xa] sm:$0x1]   ;;  %v2_v6 = vld [vmem:[%s207_s0] sm:$0x1]   ;;  %s135_s24 = smov 88   ;;  %s136_s25 = smov 80  }
   0x4   :  { %4 = vst.msk [vmem:[#allocation0] sm:$0x1] %vm3_vm0, %v2_v6   ;;  %v107_v7 = vld [vmem:[%s207_s0 + $0x9] sm:$0x1]   ;;  %v108_v8 = vld [vmem:[%s207_s0 + $0x8] sm:$0x1]  }
   0x5   :  { %s137_s30 = smov 72   ;;  %s138_s2 = smov 64   ;;  %v109_v9 = vld [vmem:[%s207_s0 + $0x7] sm:$0x1]   ;;  %v110_v10 = vld [vmem:[%s207_s0 + $0x6] sm:$0x1]  }
   0x6   :  { %13 = vrot.lane.b32.xlu0 %v102_v2, %s133_s16  ;;  %25 = vrot.lane.b32.xlu1 %v104_v3, %s134_s17  ;;  %s139_s7 = smov 56   ;;  %s140_s8 = smov 48   ;;  %v111_v11 = vld [vmem:[%s207_s0 + $0x5] sm:$0x1]   ;;  %v112_v12 = vld [vmem:[%s207_s0 + $0x4] sm:$0x1]  }
   0x7   :  { %s141_s13 = smov 40   ;;  %s142_s14 = smov 32   ;;  %v113_v13 = vld [vmem:[%s207_s0 + $0x3] sm:$0x1]   ;;  %v114_v14 = vld [vmem:[%s207_s0 + $0x2] sm:$0x1]  }
   0x8   :  { %s143_s19 = smov 24   ;;  %s144_s20 = smov 16   ;;  %v115_v15 = vld [vmem:[%s207_s0 + $0x1] sm:$0x1]   ;;  %vm27_vm4 = vcmask 851712   ;;  %vm33_vm5 = vcmask 786112  }
   0x9   :  { %s145_s0 = smov 8   ;;  %vm39_vm6 = vcmask 720512   ;;  %vm45_vm7 = vcmask 654912   ;;  %vm51_vm8 = vcmask 589312   ;;  %vm57_vm9 = vcmask 523712  }
   0xa   :  { %31 = vrot.lane.b32.xlu0 %v105_v4, %s135_s24  ;;  %37 = vrot.lane.b32.xlu1 %v106_v5, %s136_s25  ;;  %vm63_vm10 = vcmask 458112   ;;  %vm69_vm11 = vcmask 392512   ;;  %vm75_vm12 = vcmask 326912   ;;  %vm81_vm13 = vcmask 261312  }
   0xb   :  { %vm87_vm14 = vcmask 195712   ;;  %vm93_vm15 = vcmask 130112  }
   0xe   :  { %43 = vrot.lane.b32.xlu0 %v107_v7, %s137_s30  ;;  %49 = vrot.lane.b32.xlu1 %v108_v8, %s138_s2 }
  0x12   :  { %55 = vrot.lane.b32.xlu0 %v109_v9, %s139_s7  ;;  %61 = vrot.lane.b32.xlu1 %v110_v10, %s140_s8 }
  0x16   :  { %67 = vrot.lane.b32.xlu0 %v111_v11, %s141_s13  ;;  %73 = vrot.lane.b32.xlu1 %v112_v12, %s142_s14 }
  0x1a   :  { %79 = vrot.lane.b32.xlu0 %v113_v13, %s143_s19  ;;  %85 = vrot.lane.b32.xlu1 %v114_v14, %s144_s20 }
  0x1e   :  { %91 = vrot.lane.b32.xlu0 %v115_v15, %s145_s0 }
  0x74   :  { %v8_v16 = vpop.permute.xlu0 %7   ;;  %v20_v17 = vpop.permute.xlu1 %19  }
  0x75   :  { %10 = vst.msk [vmem:[#allocation0] sm:$0x1] %vm9_vm1, %v8_v16  }
  0x78   :  { %v14_v18 = vpop.permute.xlu0 %13   ;;  %v26_v19 = vpop.permute.xlu1 %25  }
  0x79   :  { %16 = vst.msk [vmem:[#allocation0] sm:$0x1] %vm15_vm2, %v14_v18  }
  0x7a   :  { %22 = vst.msk [vmem:[#allocation0] sm:$0x1] %vm21_vm3, %v20_v17  }
  0x7b   :  { %28 = vst.msk [vmem:[#allocation0] sm:$0x1] %vm27_vm4, %v26_v19  }
  0x7c   :  { %v32_v20 = vpop.permute.xlu0 %31   ;;  %v38_v21 = vpop.permute.xlu1 %37  }
  0x7d   :  { %34 = vst.msk [vmem:[#allocation0] sm:$0x1] %vm33_vm5, %v32_v20  }
  0x7e   :  { %40 = vst.msk [vmem:[#allocation0] sm:$0x1] %vm39_vm6, %v38_v21  }
  0x80   :  { %v44_v22 = vpop.permute.xlu0 %43   ;;  %v50_v23 = vpop.permute.xlu1 %49  }
  0x81   :  { %46 = vst.msk [vmem:[#allocation0] sm:$0x1] %vm45_vm7, %v44_v22  }
  0x82   :  { %52 = vst.msk [vmem:[#allocation0] sm:$0x1] %vm51_vm8, %v50_v23  }
  0x84   :  { %v56_v24 = vpop.permute.xlu0 %55   ;;  %v62_v25 = vpop.permute.xlu1 %61  }
  0x85   :  { %58 = vst.msk [vmem:[#allocation0] sm:$0x1] %vm57_vm9, %v56_v24  }
  0x86   :  { %64 = vst.msk [vmem:[#allocation0] sm:$0x1] %vm63_vm10, %v62_v25  }
  0x88   :  { %v68_v26 = vpop.permute.xlu0 %67   ;;  %v74_v27 = vpop.permute.xlu1 %73  }
  0x89   :  { %70 = vst.msk [vmem:[#allocation0] sm:$0x1] %vm69_vm11, %v68_v26  }
  0x8a   :  { %76 = vst.msk [vmem:[#allocation0] sm:$0x1] %vm75_vm12, %v74_v27  }
  0x8c   :  { %v80_v28 = vpop.permute.xlu0 %79   ;;  %v86_v29 = vpop.permute.xlu1 %85  }
  0x8d   :  { %82 = vst.msk [vmem:[#allocation0] sm:$0x1] %vm81_vm13, %v80_v28  }
  0x8e   :  { %88 = vst.msk [vmem:[#allocation0] sm:$0x1] %vm87_vm14, %v86_v29  }
  0x90   :  { %v92_v30 = vpop.permute.xlu0 %91  }
  0x91   :  { %94 = vst.msk [vmem:[#allocation0] sm:$0x1] %vm93_vm15, %v92_v30  }
  0x98   :  { %v98_v31 = vld [vmem:[#allocation0] sm:$0x1] }
  0x99   :  { %100 = vst [vmem:[%s208_s1] sm:$0x1] %v98_v31 }

// kernel: wide_residual_block.2
= control target key start
LH: loop header
LB: loop body
LE: loop exit
PB: predicated region body
PF: predicated region fallthrough
CT: control target
= control target key end

     0   :  { %s820_s18 = smov 0   ;;  %s919_s0 = inlined_call_operand.vmem [shape: bf16[32,64], index: 0, kind: input, shape index: {}]   ;;  %s920_s1 = inlined_call_operand.vmem [shape: f32[1,64], index: 1, kind: input, shape index: {}]   ;;  %s921_s2 = inlined_call_operand.vmem [shape: f32[1,64], index: 2, kind: input, shape index: {}]   ;;  %s922_s3 = inlined_call_operand.vmem [shape: bf16[3,64,128], index: 3, kind: input, shape index: {}]   ;;  %s923_s4 = inlined_call_operand.vmem [shape: bf16[32,128], index: 4, kind: output, shape index: {0}]   ;;  %s924_s5 = inlined_call_operand.vmem [shape: f32[2,2,128], index: 5, kind: output, shape index: {1}]  }
   0x1 LB: > { %s826_s19 = sadd.s32 4294967295, %s786_s18   ;;  %p647_p0 = scmp.ge.s32.totalorder %s786_s18, 1  ;;  %s786_s18 = sphi %s820_s18, %s16_s18  }
   0x2   : > { %p191_p1 = scmp.lt.s32.totalorder %s786_s18, 3 }
   0x4   : > { %p192_p2 = pnand %p647_p0, %p191_p1 }
   0x5   : > { %v768_v0 = vld [vmem:[%s922_s3] sm:$0xff] (!%p192_p2)   ;;  %v788_v1 = vmov (!%p192_p2), 0.0   ;;  %v769_v2 = vld [vmem:[%s922_s3 + $0x8] sm:$0xff] (!%p192_p2)   ;;  %vm789_vm0 = vmmov (!%p192_p2), 0   ;;  %s648_s24 = sshll.u32 (!%p192_p2), %s826_s19, 1  ;;  %v770_v4 = vld [vmem:[%s922_s3 + $0x10] sm:$0xff] (!%p192_p2)  }
   0x6   : > { %195 = sbr.rel (%p192_p2) target bundleno = 280 (0x118), region = 36  ;;  %728 = vmatprep.subr.bf16.mxu0 (!%p192_p2), %v788_v1  ;;  %716 = vmatprep.subr.bf16.mxu1 (!%p192_p2), %v788_v1  ;;  %p224_p3 = scmp.lt.s32.totalorder (!%p192_p2), %s648_s24, 3  ;;  %v772_v3 = vld [vmem:[%s922_s3 + $0x20] sm:$0xff] (!%p192_p2)   ;;  %v774_v5 = vld [vmem:[%s922_s3 + $0x28] sm:$0xff] (!%p192_p2)   ;;  %v771_v6 = vld [vmem:[%s922_s3 + $0x18] sm:$0xff] (!%p192_p2)   ;;  %vm266_vm1 = vcmask (!%p192_p2), 1040384  }
   0x7   : > { %729 = vmatpush3.bf16.msra.mxu0 (!%p192_p2), %v768_v0  ;;  %736 = vmatprep.mubr.msk.bf16.mxu0 (!%p192_p2), %vm789_vm0, %v788_v1  ;;  %v653_v7 = vld [vmem:[%s920_s1] ss:$0 sm:$0xff] (!%p192_p2)  ;;  %v776_v11 = vld [vmem:[%s922_s3 + $0x30] sm:$0xff] (!%p192_p2)   ;;  %v778_v17 = vld [vmem:[%s922_s3 + $0x38] sm:$0xff] (!%p192_p2)   ;;  %vm331_vm2 = vcmask (!%p192_p2), 523264   ;;  %vm454_vm4 = vcmask (!%p192_p2), 1046528  }
   0x8   : > { %730 = vmatprep.subr.bf16.mxu0 (!%p192_p2), %v788_v1  ;;  %724 = vmatprep.mubr.msk.bf16.mxu1 (!%p192_p2), %vm789_vm0, %v788_v1  ;;  %v654_v12 = vld [vmem:[%s921_s2] ss:$0 sm:$0xff] (!%p192_p2)  ;;  %v775_v31 = vld [vmem:[%s922_s3 + $0x48] sm:$0xff] (!%p192_p2)   ;;  %vm294_vm3 = vsmask.f32 (!%p192_p2), 7424  ;;  %v777_v35 = vld [vmem:[%s922_s3 + $0x50] sm:$0xff] (!%p192_p2)  }
   0x9   : > { %717 = vmatpush3.bf16.msra.mxu1 (!%p192_p2), %v772_v3  ;;  %v773_v24 = vld [vmem:[%s922_s3 + $0x40] sm:$0xff] (!%p192_p2)   ;;  %v779_v37 = vld [vmem:[%s922_s3 + $0x58] sm:$0xff] (!%p192_p2)   ;;  %p235_p4 = scmp.lt.s32.totalorder (!%p192_p2), %s826_s19, 1 }
   0xa   : > { %718 = vmatprep.subr.bf16.mxu1 (!%p192_p2), %v788_v1 }
   0xb   : > { %731 = vmatpush3.bf16.msra.mxu0 (!%p192_p2), %v769_v2 }
   0xc   : > { %732 = vmatprep.subr.bf16.mxu0 (!%p192_p2), %v788_v1 }
   0xd   : > { %s926_s24 = smov (!%p224_p3, %s648_s24), 3  ;;  %719 = vmatpush3.bf16.msra.mxu1 %v774_v5  ;;  %s928_s19 = smov (!%p235_p4, %s826_s19), 1 }
   0xe   : > { %s649_s29 = sshll.u32 %s926_s24, 2  ;;  %720 = vmatprep.subr.bf16.mxu1 %v788_v1  ;;  %s652_s24 = sshll.u32 %s928_s19, 1 }
   0xf   : > { %s227_s11 = scalar_lea.vmem %s919_s0, %s649_s29  ;;  %733 = vmatpush3.bf16.msra.mxu0 %v770_v4  ;;  %s233_s9 = scalar_lea.vmem %s923_s4, %s649_s29 }
  0x10   : > { %v693_v8 = vld [vmem:[%s227_s11] sm:$0xff]   ;;  %734 = vmatprep.subr.bf16.mxu0 %v788_v1  ;;  %s238_s11 = scalar_lea.vmem %s924_s5, %s652_s24 }
  0x11   : > { %v694_v9 = vunpack.c.l.bf16 %v693_v8  ;;  %v695_v10 = vunpack.c.h.bf16 %v693_v8  ;;  %721 = vmatpush3.bf16.msra.mxu1 %v776_v11 }
  0x12   : > { %722 = vmatprep.subr.bf16.mxu1 %v788_v1 }
  0x13   : > { %v251_v13 = vmul.f32 %v694_v9, %v653_v7  ;;  %v252_v14 = vmul.f32 %v695_v10, %v653_v7  ;;  %735 = vmatpush3.bf16.msra.mxu0 %v771_v6 }
  0x14   : > { %740 = vmatprep.subr.bf16.mxu0 %v788_v1 }
  0x15   : > { %v260_v15 = vadd.f32 %v654_v12, %v251_v13  ;;  %v261_v16 = vadd.f32 %v654_v12, %v252_v14  ;;  %723 = vmatpush3.bf16.msra.mxu1 %v778_v17 }
  0x17   : > { %v262_v18 = vmax.f32 %v260_v15, 0.0  ;;  %v263_v19 = vmax.f32 %v261_v16, 0.0 }
  0x19   : > { %v267_v20 = vrot.slane %v262_v18, 7  ;;  %v268_v21 = vrot.slane %v263_v19, 7 }
  0x1b   : > { %v269_v22 = vsel %vm266_vm1, %v267_v20, %v268_v21  ;;  %v273_v23 = vsel %vm266_vm1, 0.0, %v267_v20  ;;  %v274_v25 = vsel %vm266_vm1, %v268_v21, 0.0 }
  0x1c   : > { %v275_v26 = vpack.c.bf16 %v269_v22, %v273_v23  ;;  %v276_v27 = vpack.c.bf16 %v274_v25, %v274_v25 }
  0x1e   : > { %737 = vmatmul.mubr.msk.bf16.vlgmr.msra.gmra.mrb[0].mxu0 %vm331_vm2, %v275_v26  ;;  %v296_v28 = vshrl.u32 %v275_v26, 16  ;;  %v298_v29 = vshll.u32 %v275_v26, 16  ;;  %v303_v30 = vshll.u32 %v276_v27, 16  ;;  %v455_v38 = vrot.slane %v275_v26, 1 }
  0x1f   : > { %741 = vmatpush3.bf16.msra.mxu0 %v773_v24  ;;  %748 = vmatprep.mubr.msk.bf16.mxu0 %vm789_vm0, %v788_v1  ;;  %v456_v39 = vrot.slane %v276_v27, 1 }
  0x20   : > { %742 = vmatprep.subr.bf16.mxu0 %v788_v1  ;;  %v300_v32 = vrot.slane %v298_v29, 1  ;;  %v305_v33 = vrot.slane %v303_v30, 1 }
  0x21   : > { %v457_v40 = vsel %vm454_vm4, %v455_v38, %v456_v39 }
  0x22   : > { %v301_v34 = vor.u32 %v300_v32, %v296_v28 }
  0x23   : > { %743 = vmatpush3.bf16.msra.mxu0 %v775_v31 }
  0x24   : > { %744 = vmatprep.subr.bf16.mxu0 %v788_v1  ;;  %v306_v36 = vsel %vm294_vm3, %v301_v34, %v305_v33 }
  0x25   : > { %725 = vmatmul.mubr.msk.bf16.vlgmr.msra.gmra.mrb[0].mxu1 %vm331_vm2, %v306_v36 }
  0x27   : > { %745 = vmatpush3.bf16.msra.mxu0 %v777_v35 }
  0x28   : > { %746 = vmatprep.subr.bf16.mxu0 %v788_v1 }
  0x2b   : > { %747 = vmatpush3.bf16.msra.mxu0 %v779_v37 }
  0x2e   : > { %749 = vmatmul.mubr.msk.bf16.vlgmr.msra.gmra.mrb[0].mxu0 %vm331_vm2, %v457_v40 }
  0xf8   : > { %v369_v41 = vpop.f32.mrb[0].mxu1 }
  0xf9   : > { %v726_v42 = vpop.f32.mrb[1].mxu1 }
  0xfa   : > { %v372_v43 = vpop.f32.mrb[2].mxu1 }
  0xfb   : > { %v727_v44 = vpop.f32.mrb[3].mxu1 }
 0x101   : > { %v519_v45 = vpop.f32.mrb[0].mxu0 }
 0x102   : > { %v752_v46 = vadd.f32 %v519_v45, %v369_v41  ;;  %v750_v47 = vpop.f32.mrb[1].mxu0 }
 0x103   : > { %v522_v48 = vpop.f32.mrb[2].mxu0 }
 0x104   : > { %v753_v49 = vadd.f32 %v522_v48, %v372_v43  ;;  %v751_v50 = vpop.f32.mrb[3].mxu0  ;;  %v545_v51 = vmul.f32 %v752_v46, %v752_v46 }
 0x106   : > { %v699_v52 = vpack.c.bf16 %v753_v49, %v752_v46  ;;  %v538_v53 = vadd.f32 %v753_v49, %v752_v46  ;;  %v546_v54 = vmul.f32 %v753_v49, %v753_v49 }
 0x108   : > { %700 = vst [vmem:[%s233_s9] sm:$0xff] %v699_v52   ;;  %v539_v55 = vrot.slane %v538_v53, 4  ;;  %v547_v56 = vadd.f32 %v546_v54, %v545_v51 }
 0x10a   : > { %v540_v57 = vadd.f32 %v539_v55, %v538_v53  ;;  %v548_v58 = vrot.slane %v547_v56, 4 }
 0x10c   : > { %v541_v59 = vrot.slane %v540_v57, 2  ;;  %v549_v60 = vadd.f32 %v548_v58, %v547_v56 }
 0x10e   : > { %v542_v61 = vadd.f32 %v541_v59, %v540_v57  ;;  %v550_v62 = vrot.slane %v549_v60, 2 }
 0x110   : > { %v543_v63 = vrot.slane %v542_v61, 1  ;;  %v551_v0 = vadd.f32 %v550_v62, %v549_v60 }
 0x112   : > { %v552_v1 = vrot.slane %v551_v0, 1  ;;  %v544_v2 = vadd.f32 %v543_v63, %v542_v61 }
 0x114   : > { %v553_v3 = vadd.f32 %v552_v1, %v551_v0 }
 0x116   : > { %v554_v4 = vsel %vm266_vm1, %v544_v2, %v553_v3 }
 0x117   : > { %555 = vst [vmem:[%s238_s11] sm:$0x3] %v554_v4 }
 0x118 PF: > { %s16_s18 = sadd.s32 1, %s786_s18  }
 0x119   : > { %p13_p5 = scmp.ge.s32.totalorder %s16_s18, 4  }
 0x11b   :  { %15 = sbr.rel (!%p13_p5) target bundleno = 1 (0x1), region = 80 }

// kernel: wide_residual_block.3
= control target key start
LH: loop header
LB: loop body
LE: loop exit
PB: predicated region body
PF: predicated region fallthrough
CT: control target
= control target key end

     0   :  { %s1096_s21 = smov 0   ;;  %s1258_s0 = inlined_call_operand.vmem [shape: bf16[32,128], index: 0, kind: input, shape index: {}]   ;;  %s1259_s1 = inlined_call_operand.vmem [shape: bf16[32,64], index: 1, kind: input, shape index: {}]   ;;  %s1260_s2 = inlined_call_operand.vmem [shape: f32[1,128], index: 2, kind: input, shape index: {}]   ;;  %s1261_s3 = inlined_call_operand.vmem [shape: f32[1,128], index: 3, kind: input, shape index: {}]   ;;  %s1262_s4 = inlined_call_operand.vmem [shape: bf16[3,128,128], index: 4, kind: input, shape index: {}]   ;;  %s1263_s5 = inlined_call_operand.vmem [shape: bf16[64,128], index: 5, kind: input, shape index: {}]   ;;  %s1264_s6 = inlined_call_operand.vmem [shape: f32[32,128], index: 6, kind: output, shape index: {}]  }
   0x1 LB: > { %s811_s22 = sadd.s32 4294967295, %s1056_s21   ;;  %p815_p0 = scmp.ge.s32.totalorder %s1056_s21, 1  ;;  %s1056_s21 = sphi %s1096_s21, %s16_s21  }
   0x2   : > { %p224_p1 = scmp.lt.s32.totalorder %s1056_s21, 3 }
   0x4   : > { %p225_p2 = pnand %p815_p0, %p224_p1 }
   0x5   : > { %v1021_v0 = vld [vmem:[%s1262_s4] sm:$0xff] (!%p225_p2)   ;;  %v1058_v1 = vmov (!%p225_p2), 0.0   ;;  %v1023_v3 = vld [vmem:[%s1262_s4 + $0x8] sm:$0xff] (!%p225_p2)   ;;  %vm1059_vm0 = vmmov (!%p225_p2), 0   ;;  %s816_s29 = sshll.u32 (!%p225_p2), %s811_s22, 1  ;;  %v1025_v5 = vld [vmem:[%s1262_s4 + $0x10] sm:$0xff] (!%p225_p2)  }
   0x6   : > { %228 = sbr.rel (%p225_p2) target bundleno = 289 (0x121), region = 44  ;;  %928 = vmatprep.subr.bf16.mxu1 (!%p225_p2), %v1058_v1  ;;  %960 = vmatprep.subr.bf16.mxu0 (!%p225_p2), %v1058_v1  ;;  %v1022_v2 = vld [vmem:[%s1262_s4 + $0x40] sm:$0xff] (!%p225_p2)   ;;  %v1024_v4 = vld [vmem:[%s1262_s4 + $0x48] sm:$0xff] (!%p225_p2)   ;;  %p260_p3 = scmp.lt.s32.totalorder (!%p225_p2), %s816_s29, 3  ;;  %v1026_v6 = vld [vmem:[%s1262_s4 + $0x50] sm:$0xff] (!%p225_p2)   ;;  %vm304_vm1 = vcmask (!%p225_p2), 1040384  }
   0x7   : > { %929 = vmatpush3.bf16.msra.mxu1 (!%p225_p2), %v1021_v0  ;;  %944 = vmatprep.mubr.msk.bf16.mxu1 (!%p225_p2), %vm1059_vm0, %v1058_v1  ;;  %v1027_v7 = vld [vmem:[%s1262_s4 + $0x18] sm:$0xff] (!%p225_p2)   ;;  %v1029_v9 = vld [vmem:[%s1262_s4 + $0x20] sm:$0xff] (!%p225_p2)   ;;  %v1031_v15 = vld [vmem:[%s1262_s4 + $0x28] sm:$0xff] (!%p225_p2)   ;;  %vm1060_vm3 = vmmov (!%p225_p2), 1   ;;  %vm521_vm5 = vsmask.f32 (!%p225_p2), 7424 }
   0x8   : > { %961 = vmatpush3.bf16.msra.mxu0 (!%p225_p2), %v1022_v2  ;;  %930 = vmatprep.subr.bf16.mxu1 (!%p225_p2), %v1058_v1  ;;  %v1028_v8 = vld [vmem:[%s1262_s4 + $0x58] sm:$0xff] (!%p225_p2)   ;;  %v1030_v10 = vld [vmem:[%s1262_s4 + $0x60] sm:$0xff] (!%p225_p2)   ;;  %v1032_v17 = vld [vmem:[%s1262_s4 + $0x68] sm:$0xff] (!%p225_p2)   ;;  %vm459_vm6 = vcmask (!%p225_p2), 523264   ;;  %vm645_vm7 = vcmask (!%p225_p2), 1046528  }
   0x9   : > { %962 = vmatprep.subr.bf16.mxu0 (!%p225_p2), %v1058_v1  ;;  %976 = vmatprep.mubr.msk.bf16.mxu0 (!%p225_p2), %vm1059_vm0, %v1058_v1  ;;  %v822_v12 = vld [vmem:[%s1260_s2] ss:$0 sm:$0xff] (!%p225_p2)  ;;  %v1033_v22 = vld [vmem:[%s1262_s4 + $0x30] sm:$0xff] (!%p225_p2)   ;;  %v1035_v26 = vld [vmem:[%s1262_s4 + $0x38] sm:$0xff] (!%p225_p2)  }
   0xa   : > { %v823_v16 = vld [vmem:[%s1261_s3] ss:$0 sm:$0xff] (!%p225_p2)  ;;  %v1034_v23 = vld [vmem:[%s1262_s4 + $0x70] sm:$0xff] (!%p225_p2)   ;;  %v1036_v29 = vld [vmem:[%s1262_s4 + $0x78] sm:$0xff] (!%p225_p2)  }
   0xb   : > { %931 = vmatpush3.bf16.msra.mxu1 (!%p225_p2), %v1023_v3  ;;  %vm832_vm2 = vmneg (!%p225_p2), %vm304_vm1  ;;  %v1037_v36 = vld [vmem:[%s1263_s5] sm:$0xff] (!%p225_p2)   ;;  %v1039_v44 = vld [vmem:[%s1263_s5 + $0x8] sm:$0xff] (!%p225_p2)  }
   0xc   : > { %963 = vmatpush3.bf16.msra.mxu0 (!%p225_p2), %v1024_v4  ;;  %932 = vmatprep.subr.bf16.mxu1 (!%p225_p2), %v1058_v1  ;;  %vm833_vm4 = vmpackc.low (!%p225_p2), %vm1060_vm3, %vm832_vm2  ;;  %v1038_v43 = vld [vmem:[%s1262_s4 + $0x80] sm:$0xff] (!%p225_p2)   ;;  %v1040_v46 = vld [vmem:[%s1262_s4 + $0x88] sm:$0xff] (!%p225_p2)  }
   0xd   : > { %s1266_s29 = smov (!%p260_p3, %s816_s29), 3  ;;  %964 = vmatprep.subr.bf16.mxu0 %v1058_v1  ;;  %v1041_v47 = vld [vmem:[%s1263_s5 + $0x10] sm:$0xff]   ;;  %v1043_v49 = vld [vmem:[%s1263_s5 + $0x18] sm:$0xff]   ;;  %v1046_v52 = vld [vmem:[%s1262_s4 + $0xa0] sm:$0xff]  }
   0xe   : > { %s817_s14 = sshll.u32 %s1266_s29, 2  ;;  %v1042_v48 = vld [vmem:[%s1262_s4 + $0x90] sm:$0xff]   ;;  %v1044_v51 = vld [vmem:[%s1262_s4 + $0x98] sm:$0xff]   ;;  %v1047_v53 = vld [vmem:[%s1262_s4 + $0xa8] sm:$0xff]   ;;  %s821_s24 = sshll.u32 %s1266_s29, 3 }
   0xf   : > { %933 = vmatpush3.bf16.msra.mxu1 %v1025_v5  ;;  %s263_s19 = scalar_lea.vmem %s1258_s0, %s817_s14  ;;  %v1048_v54 = vld [vmem:[%s1262_s4 + $0xb0] sm:$0xff]   ;;  %v1049_v55 = vld [vmem:[%s1262_s4 + $0xb8] sm:$0xff]   ;;  %s275_s27 = scalar_lea.vmem %s1264_s6, %s821_s24 }
  0x10   : > { %965 = vmatpush3.bf16.msra.mxu0 %v1026_v6  ;;  %934 = vmatprep.subr.bf16.mxu1 %v1058_v1  ;;  %v893_v11 = vld [vmem:[%s263_s19] sm:$0xff]   ;;  %s1186_s19 = scalar_lea.vmem %s1259_s1, %s817_s14 }
  0x11   : > { %966 = vmatprep.subr.bf16.mxu0 %v1058_v1  ;;  %v894_v13 = vunpack.c.l.bf16 %v893_v11  ;;  %v895_v14 = vunpack.c.h.bf16 %v893_v11  ;;  %v1045_v50 = vld [vmem:[%s1186_s19] sm:$0xff]  }
  0x13   : > { %935 = vmatpush3.bf16.msra.mxu1 %v1027_v7  ;;  %v289_v18 = vmul.f32 %v894_v13, %v822_v12  ;;  %v290_v19 = vmul.f32 %v895_v14, %v822_v12 }
  0x14   : > { %967 = vmatpush3.bf16.msra.mxu0 %v1028_v8  ;;  %936 = vmatprep.subr.bf16.mxu1 %v1058_v1 }
  0x15   : > { %968 = vmatprep.subr.bf16.mxu0 %v1058_v1  ;;  %v298_v20 = vadd.f32 %v823_v16, %v289_v18  ;;  %v299_v21 = vadd.f32 %v823_v16, %v290_v19 }
  0x17   : > { %937 = vmatpush3.bf16.msra.mxu1 %v1029_v9  ;;  %v300_v24 = vmax.f32 %v298_v20, 0.0  ;;  %v301_v25 = vmax.f32 %v299_v21, 0.0 }
  0x18   : > { %969 = vmatpush3.bf16.msra.mxu0 %v1030_v10  ;;  %938 = vmatprep.subr.bf16.mxu1 %v1058_v1 }
  0x19   : > { %970 = vmatprep.subr.bf16.mxu0 %v1058_v1  ;;  %v305_v27 = vrot.slane %v300_v24, 7  ;;  %v306_v28 = vrot.slane %v301_v25, 7 }
  0x1b   : > { %939 = vmatpush3.bf16.msra.mxu1 %v1031_v15  ;;  %v307_v30 = vsel %vm304_vm1, %v305_v27, %v306_v28  ;;  %v311_v31 = vsel %vm304_vm1, 0.0, %v305_v27  ;;  %v312_v32 = vsel %vm304_vm1, %v306_v28, 0.0 }
  0x1c   : > { %971 = vmatpush3.bf16.msra.mxu0 %v1032_v17  ;;  %940 = vmatprep.subr.bf16.mxu1 %v1058_v1  ;;  %v1193_v33 = vpack.c.bf16 %v307_v30, %v311_v31  ;;  %v314_v34 = vpack.c.bf16 %v312_v32, %v312_v32  ;;  %v834_v35 = vpack.c.bf16 %v307_v30, %v305_v27 }
  0x1d   : > { %972 = vmatprep.subr.bf16.mxu0 %v1058_v1 }
  0x1e   : > { %v523_v37 = vshrl.u32 %v1193_v33, 16  ;;  %v525_v38 = vshll.u32 %v1193_v33, 16  ;;  %v530_v39 = vshll.u32 %v314_v34, 16  ;;  %v646_v56 = vrot.slane %v1193_v33, 1 }
  0x1f   : > { %941 = vmatpush3.bf16.msra.mxu1 %v1033_v22  ;;  %v647_v57 = vrot.slane %v314_v34, 1 }
  0x20   : > { %973 = vmatpush3.bf16.msra.mxu0 %v1034_v23  ;;  %942 = vmatprep.subr.bf16.mxu1 %v1058_v1  ;;  %v527_v40 = vrot.slane %v525_v38, 1  ;;  %v532_v41 = vrot.slane %v530_v39, 1 }
  0x21   : > { %974 = vmatprep.subr.bf16.mxu0 %v1058_v1  ;;  %v648_v58 = vsel %vm645_vm7, %v646_v56, %v647_v57 }
  0x22   : > { %v528_v42 = vor.u32 %v527_v40, %v523_v37 }
  0x23   : > { %943 = vmatpush3.bf16.msra.mxu1 %v1035_v26 }
  0x24   : > { %975 = vmatpush3.bf16.msra.mxu0 %v1036_v29  ;;  %948 = vmatprep.subr.bf16.mxu1 %v1058_v1  ;;  %v533_v45 = vsel %vm521_vm5, %v528_v42, %v532_v41 }
  0x25   : > { %980 = vmatprep.subr.bf16.mxu0 %v1058_v1 }
  0x26   : > { %945 = vmatmul.mubr.msk.bf16.vlgmr.msra.gmra.mrb[0].mxu1 %vm833_vm4, %v834_v35 }
  0x27   : > { %949 = vmatpush3.bf16.msra.mxu1 %v1037_v36  ;;  %956 = vmatprep.mubr.msk.bf16.mxu1 %vm1059_vm0, %v1058_v1 }
  0x28   : > { %950 = vmatprep.subr.bf16.mxu1 %v1058_v1  ;;  %977 = vmatmul.mubr.bf16.vlgmr.msra.gmra.mrb[0].mxu0 %v533_v45 }
  0x29   : > { %981 = vmatpush3.bf16.msra.mxu0 %v1038_v43  ;;  %996 = vmatprep.mubr.msk.bf16.mxu0 %vm1059_vm0, %v1058_v1 }
  0x2a   : > { %982 = vmatprep.subr.bf16.mxu0 %v1058_v1 }
  0x2b   : > { %951 = vmatpush3.bf16.msra.mxu1 %v1039_v44 }
  0x2c   : > { %952 = vmatprep.subr.bf16.mxu1 %v1058_v1 }
  0x2d   : > { %983 = vmatpush3.bf16.msra.mxu0 %v1040_v46 }
  0x2e   : > { %984 = vmatprep.subr.bf16.mxu0 %v1058_v1 }
  0x2f   : > { %953 = vmatpush3.bf16.msra.mxu1 %v1041_v47 }
  0x30   : > { %954 = vmatprep.subr.bf16.mxu1 %v1058_v1 }
  0x31   : > { %985 = vmatpush3.bf16.msra.mxu0 %v1042_v48 }
  0x32   : > { %986 = vmatprep.subr.bf16.mxu0 %v1058_v1 }
  0x33   : > { %955 = vmatpush3.bf16.msra.mxu1 %v1043_v49 }
  0x35   : > { %987 = vmatpush3.bf16.msra.mxu0 %v1044_v51 }
  0x36   : > { %957 = vmatmul.mubr.msk.bf16.vlgmr.msra.gmra.mrb[0].mxu1 %vm459_vm6, %v1045_v50  ;;  %988 = vmatprep.subr.bf16.mxu0 %v1058_v1 }
  0x39   : > { %989 = vmatpush3.bf16.msra.mxu0 %v1046_v52 }
  0x3a   : > { %990 = vmatprep.subr.bf16.mxu0 %v1058_v1 }
  0x3d   : > { %991 = vmatpush3.bf16.msra.mxu0 %v1047_v53 }
  0x3e   : > { %992 = vmatprep.subr.bf16.mxu0 %v1058_v1 }
  0x41   : > { %993 = vmatpush3.bf16.msra.mxu0 %v1048_v54 }
  0x42   : > { %994 = vmatprep.subr.bf16.mxu0 %v1058_v1 }
  0x45   : > { %995 = vmatpush3.bf16.msra.mxu0 %v1049_v55 }
  0x48   : > { %997 = vmatmul.mubr.bf16.vlgmr.msra.gmra.mrb[0].mxu0 %v648_v58 }
 0x109   : > { %v497_v59 = vpop.f32.mrb[0].mxu1 }
 0x10a   : > { %v958_v60 = vpop.f32.mrb[1].mxu1 }
 0x10b   : > { %v500_v61 = vpop.f32.mrb[2].mxu1 }
 0x10c   : > { %v959_v62 = vpop.f32.mrb[3].mxu1 }
 0x11b   : > { %v732_v63 = vpop.f32.mrb[0].mxu0 }
 0x11c   : > { %v1000_v0 = vadd.f32 %v732_v63, %v497_v59  ;;  %v998_v2 = vpop.f32.mrb[1].mxu0 }
 0x11d   : > { %v735_v3 = vpop.f32.mrb[2].mxu0 }
 0x11e   : > { %741 = vst [vmem:[%s275_s27] sm:$0xff] %v1000_v0  ;;  %v1001_v4 = vadd.f32 %v735_v3, %v500_v61  ;;  %v999_v1 = vpop.f32.mrb[3].mxu0 }
 0x120   : > { %742 = vst [vmem:[%s275_s27 + $0x8] sm:$0xff] %v1001_v4 }
 0x121 PF: > { %s16_s21 = sadd.s32 1, %s1056_s21  }
 0x122   : > { %p13_p4 = scmp.ge.s32.totalorder %s16_s21, 4  }
 0x124   :  { %15 = sbr.rel (!%p13_p4) target bundleno = 1 (0x1), region = 79 }

</bundles_post_ra>
